<compile_context>
chip_gen: v7x
topology: tpu7x:2x2x1
jax: 0.10.0
libtpu: 0.0.40
codegen_flags: <defaults>
</compile_context>

<pallas_src>
import math
import jax
import jax.numpy as jnp
from jax.experimental import pallas as pl
from jax.experimental.pallas import tpu as pltpu


def _build_pe(d_model: int, max_len: int = 8000) -> jnp.ndarray:
    """Deterministic sinusoidal PE table, shape (max_len, d_model) — matches the
    PyTorch buffer exactly (sin on even columns, cos on odd columns)."""
    position = jnp.arange(0, max_len, dtype=jnp.float32)[:, None]           # (max_len, 1)
    div_term = jnp.exp(jnp.arange(0, d_model, 2, dtype=jnp.float32)
                       * (-math.log(10000.0) / d_model))                    # (d_model//2,)
    ang = position * div_term                                               # (max_len, d_model//2)
    pe = jnp.zeros((max_len, d_model), dtype=jnp.float32)
    pe = pe.at[:, 0::2].set(jnp.sin(ang))
    pe = pe.at[:, 1::2].set(jnp.cos(ang))
    return pe


def _pick_tile_s(s: int, b: int, d: int, dtype_bytes: int = 4,
                 target_bytes: int = 2 * 1024 * 1024) -> int:
    """Rows per S-tile so that a (B, tile_s, D) slab is ~2 MiB, 8-aligned.

    ~2 MiB per array × 3 arrays × 2 pipeline buffers ≈ 12 MiB, which sits inside
    the scoped-VMEM default on every chip generation (incl. v5e's 16 MiB) while
    keeping this HBM-bound add near the roofline. No divisor constraint: the
    ragged cdiv grid handles the remainder tile via masked reads/writes.
    """
    rows = max(8, (target_bytes // (b * d * dtype_bytes)) // 8 * 8)
    s_ceil = -(-s // 8) * 8
    return min(s_ceil, rows)


def _add_pe_kernel(x_ref, pe_ref, o_ref):
    # x_ref / o_ref: (B, tile_s, D) slab; pe_ref: (tile_s, D) window of the table.
    # Broadcast over batch is a free VPU op — the kernel is HBM-bound, not VALU-bound.
    o_ref[...] = x_ref[...] + pe_ref[...][None, :, :]


def positional_encoding_forward(x: jnp.ndarray, pe_full: jnp.ndarray) -> jnp.ndarray:
    """x: (B, S, D) float32; pe_full: (max_len, D). Returns x + pe[:S]."""
    B, S, D = x.shape
    max_len, d_pe = pe_full.shape
    assert d_pe == D, "d_model mismatch between x and PE table"
    assert S <= max_len, "sequence length exceeds PositionalEncoding max_len"

    tile_s = _pick_tile_s(S, B, D, dtype_bytes=x.dtype.itemsize)
    # Ragged grid: the partial last block is handled by Pallas masked reads/writes;
    # the (8,128) constraint applies to the block shape, which stays aligned.
    grid = (pl.cdiv(S, tile_s),)

    out = pl.pallas_call(
        _add_pe_kernel,
        out_shape=jax.ShapeDtypeStruct((B, S, D), x.dtype),
        grid_spec=pltpu.PrefetchScalarGridSpec(
            num_scalar_prefetch=0,
            grid=grid,
            in_specs=[
                # full batch folded into the block -> 1-D grid over S tiles only
                pl.BlockSpec((B, tile_s, D), lambda s: (0, s, 0)),
                # window directly into the full (max_len, D) PE table
                pl.BlockSpec((tile_s, D), lambda s: (s, 0)),
            ],
            out_specs=pl.BlockSpec((B, tile_s, D), lambda s: (0, s, 0)),
        ),
        # out has the same shape/dtype as x now that the pad is gone; aliasing lets
        # XLA drop the separate output allocation when x is dead after this op.
        input_output_aliases={0: 0},
        compiler_params=pltpu.CompilerParams(
            dimension_semantics=("parallel",),  # v7x megacore split over the S-tile axis
        ),
    )(x, pe_full)
    return out


if __name__ == "__main__":
    # Small shapes consistent with the module: d_model=128 (lane-dense);
    # S deliberately NOT a multiple of 8 to exercise the ragged (masked) last block.
    B, S, D = 2, 13, 128
    MAX_LEN = 8000  # same as the PyTorch module's buffer

    key = jax.random.PRNGKey(0)
    x = jax.random.normal(key, (B, S, D), dtype=jnp.float32)

    pe_full = _build_pe(D, MAX_LEN)

    # reference computed before the kernel call (output is aliased onto x)
    ref = x + pe_full[None, :S, :]

    out = positional_encoding_forward(x, pe_full)
    out = jax.block_until_ready(out)

    assert out.shape == (B, S, D)
    assert jnp.allclose(out, ref, atol=1e-6), "mismatch vs reference"

    print("KERNEL_OK")
</pallas_src>

<mosaic_0001>
module attributes {stable_mosaic.version = 11 : i64} {
  func.func @_add_pe_kernel(%arg0: i32, %arg1: memref<2x16x128xf32, #tpu.memory_space<vmem>>, %arg2: memref<16x128xf32, #tpu.memory_space<vmem>>, %arg3: memref<2x16x128xf32, #tpu.memory_space<vmem>>) attributes {dimension_semantics = [#tpu.dimension_semantics<parallel>], iteration_bounds = array<i64: 1>, scalar_prefetch = 0 : i64, scratch_operands = 0 : i64, tpu.core_type = #tpu.core_type<tc>, window_params = [{transform_indices = @transform_0, window_bounds = array<i64: 2, 16, 128>}, {transform_indices = @transform_1, window_bounds = array<i64: 16, 128>}, {transform_indices = @transform_2, window_bounds = array<i64: 2, 16, 128>}]} {
    %c0 = arith.constant 0 : index
    %c0_0 = arith.constant 0 : index
    %c0_1 = arith.constant 0 : index
    %0 = vector.load %arg1[%c0, %c0_0, %c0_1] : memref<2x16x128xf32, #tpu.memory_space<vmem>>, vector<2x16x128xf32>
    %c0_2 = arith.constant 0 : index
    %c0_3 = arith.constant 0 : index
    %1 = vector.load %arg2[%c0_2, %c0_3] : memref<16x128xf32, #tpu.memory_space<vmem>>, vector<16x128xf32>
    %2 = vector.shape_cast %1 : vector<16x128xf32> to vector<1x16x128xf32>
    %3 = vector.broadcast %2 : vector<1x16x128xf32> to vector<2x16x128xf32>
    %4 = arith.addf %0, %3 : vector<2x16x128xf32>
    %c0_4 = arith.constant 0 : index
    %c0_5 = arith.constant 0 : index
    %c0_6 = arith.constant 0 : index
    %5 = vector.load %arg3[%c0_4, %c0_5, %c0_6] : memref<2x16x128xf32, #tpu.memory_space<vmem>>, vector<2x16x128xf32>
    tpu.vector_store %arg3[%c0_4, %c0_5, %c0_6], %4 {strides = array<i32>} : memref<2x16x128xf32, #tpu.memory_space<vmem>>, vector<2x16x128xf32>,
    return
  }
  func.func @transform_0(%arg0: i32) -> (i32, i32, i32) {
    %c0_i32 = arith.constant 0 : i32
    %c0_i32_0 = arith.constant 0 : i32
    %c0_i32_1 = arith.constant 0 : i32
    return %c0_i32, %arg0, %c0_i32_0 : i32, i32, i32
  }
  func.func @transform_1(%arg0: i32) -> (i32, i32) {
    %c0_i32 = arith.constant 0 : i32
    %c0_i32_0 = arith.constant 0 : i32
    return %arg0, %c0_i32 : i32, i32
  }
  func.func @transform_2(%arg0: i32) -> (i32, i32, i32) {
    %c0_i32 = arith.constant 0 : i32
    %c0_i32_0 = arith.constant 0 : i32
    %c0_i32_1 = arith.constant 0 : i32
    return %c0_i32, %arg0, %c0_i32_0 : i32, i32, i32
  }
}

</mosaic_0001>

<bundles_post_ra>
// kernel: tpu_custom_call.1
= control target key start
LH: loop header
LB: loop body
LE: loop exit
PB: predicated region body
PF: predicated region fallthrough
CT: control target
= control target key end

     0   :  { %7 = vsyncpa [#allocation3], 0  ;;  %s71_s9 = smov [#allocation2]   ;;  %s128_s0 = inlined_call_operand.vmem [shape: f32[2,13,128], index: 0, kind: input, shape index: {}, may-alias: {0,2}]   ;;  %s129_s1 = inlined_call_operand.hbm [shape: f32[8000,128], index: 1, kind: input, shape index: {}]   ;;  %s130_s2 = inlined_call_operand.vmem [shape: f32[2,13,128], index: 2, kind: output, shape index: {}, may-alias: {0,2}]  }
   0x1   :  { %s15_s10 = sshll.u32 %s71_s9, 4  ;;  %s47_s13 = scalar_lea.hbm %s129_s1, 256  ;;  %s16_s10 = int_to_ptr.vmem [resolvable:$true] %s15_s10 }
   0x2   :  { %p48_p0 = scmp.ne.s32.totalorder %s129_s1, %s47_s13  ;;  %s49_s18 = scalar_lea.hbm %s129_s1, 128000 }
   0x3   :  { %p50_p1 = scmp.lt.u32.totalorder %s49_s18, %s47_s13  ;;  %p51_p2 = scmp.lt.u32.totalorder %s47_s13, %s129_s1 }
   0x5   :  { %p52_p3 = por %p51_p2, %p50_p1 }
   0x7   :  { %p53_p4 = pnand %p52_p3, %p48_p0 }
   0x9   :  { %56 = shalt.err (!%p53_p4)
}
   0xa   :  { %s57_s21 = scalar_lea.vmem %s16_s10, 256  ;;  %p62_p6 = scmp.lt.s32.totalorder %s16_s10, %s16_s10 }
   0xb   :  { %p58_p5 = scmp.ne.s32.totalorder %s16_s10, %s57_s21  ;;  %p63_p7 = scmp.lt.s32.totalorder %s57_s21, %s57_s21 }
   0xd   :  { %p64_p8 = por %p63_p7, %p62_p6 }
   0xf   :  { %p65_p9 = pnand %p64_p8, %p58_p5 }
  0x11   :  { %68 = shalt.err (!%p65_p9)
}
  0x12   :  { %s72_s22 = smov 128   ;;  %s73_s23 = smov 8  }
  0x13   :  { %21 = dma.hbm_to_vmem [thread:$0]  %s129_s1, 256, %s16_s10, [#allocation3], %s72_s22, %s72_s22, %s73_s23  }
  0x14   :  { %69 = dma.done.wait [#allocation3], 256  }
  0x15   :  { %70 = vsyncadd [#allocation3], 4294967040  ;;  %v25_v0 = vld [vmem:[%s128_s0] sm:$0xff]  ;;  %v26_v2 = vld [vmem:[%s128_s0 + $0x8] sm:$0xff] }
  0x16   :  { %v29_v1 = vld [vmem:[#allocation2] sm:$0xff]  ;;  %v30_v4 = vld [vmem:[#allocation2 + $0x8] sm:$0xff]  ;;  %v27_v5 = vld [vmem:[%s128_s0 + $0x10] sm:$0xff] }
  0x17   :  { %v31_v3 = vadd.f32 %v29_v1, %v25_v0  ;;  %v28_v6 = vld [vmem:[%s128_s0 + $0x18] sm:$0xff]  ;;  %v32_v7 = vadd.f32 %v30_v4, %v26_v2  ;;  %v33_v8 = vadd.f32 %v29_v1, %v27_v5 }
  0x18   :  { %v34_v9 = vadd.f32 %v30_v4, %v28_v6 }
  0x19   :  { %35 = vst [vmem:[%s130_s2] sm:$0xff] %v31_v3  ;;  %36 = vst [vmem:[%s130_s2 + $0x8] sm:$0xff] %v32_v7 }
  0x1a   :  { %37 = vst [vmem:[%s130_s2 + $0x10] sm:$0xff] %v33_v8  ;;  %38 = vst [vmem:[%s130_s2 + $0x18] sm:$0xff] %v34_v9 }
  0x1b   :  { %43 = vsyncpa [#allocation3], 1 }

</bundles_post_ra>
